<compile_context>
chip_gen: v5e
topology: v5e:2x2
jax: 0.10.0
libtpu: 0.0.40
codegen_flags: <defaults>
</compile_context>

<pallas_src>
import jax
import jax.numpy as jnp
from jax.experimental import pallas as pl
from jax.experimental.pallas import tpu as pltpu

LN_EPS = 1e-5        # torch.nn.LayerNorm default
NEG_BIG = -1e30      # bias for padded action lanes -> exp() underflows to 0


def _round_up(x, m):
    return ((x + m - 1) // m) * m


def _layernorm_f32(x, gamma, beta):
    # Single-pass LayerNorm over the last dim (biased variance, matches torch).
    # mean and E[x^2] are independent cross-lane reductions, so the XLU critical
    # path is shorter than the two-pass mean -> center -> mean(xc^2) form.
    # f32 only; activations here are unit-scale (post-LN/ReLU) so the
    # cancellation form is numerically safe.
    mean = jnp.mean(x, axis=-1, keepdims=True)
    msq = jnp.mean(x * x, axis=-1, keepdims=True)
    var = jnp.maximum(msq - mean * mean, 0.0)
    inv = jax.lax.rsqrt(var + LN_EPS)
    return (x - mean) * inv * gamma + beta


def actor_kernel(x_ref,
                 w1_ref, b1_ref, g1_ref, bt1_ref,
                 w2_ref, b2_ref, g2_ref, bt2_ref,
                 w3_ref, b3_ref,
                 out_ref):
    # Input tile arrives as f32; cast to bf16 on the VPU right before the MXU
    # so the wrapper never does a separate cast pass over `state`.
    x = x_ref[...].astype(jnp.bfloat16)

    # Layer 1: Linear (bf16 operands, f32 accumulation) + LayerNorm + ReLU.
    h = jnp.dot(x, w1_ref[...], preferred_element_type=jnp.float32) + b1_ref[...]
    h = jnp.maximum(_layernorm_f32(h, g1_ref[...], bt1_ref[...]), 0.0)

    # Hidden layer: Linear + LayerNorm + ReLU.
    h = jnp.dot(h.astype(jnp.bfloat16), w2_ref[...],
                preferred_element_type=jnp.float32) + b2_ref[...]
    h = jnp.maximum(_layernorm_f32(h, g2_ref[...], bt2_ref[...]), 0.0)

    # Output layer: Linear + Softmax over a lane-dense (128-padded) action axis.
    # Padded lanes carry bias -1e30, so exp(logit - max) == 0 there and the
    # first A lanes hold the exact softmax over the real actions.  Softmax math
    # stays in f32 (required for the -1e30 trick to be exact and NaN-free).
    logits = jnp.dot(h.astype(jnp.bfloat16), w3_ref[...],
                     preferred_element_type=jnp.float32) + b3_ref[...]
    m = jnp.max(logits, axis=-1, keepdims=True)
    e = jnp.exp(logits - m)
    s = jnp.sum(e, axis=-1, keepdims=True)
    # Exact f32 divide (numerical hygiene for PPO log-prob ratios).
    out_ref[...] = (e / s).astype(out_ref.dtype)


def _pick_batch_tile(batch, batch_tile):
    if batch_tile is not None:
        return batch_tile
    rows = _round_up(max(batch, 1), 8)
    # Single grid step up to 1024 rows:
    #   * v5e/v6e: one TensorCore, the grid is a serial loop -> splitting a
    #     small batch just pays the ~600-cycle per-step cost multiple times.
    #   * v7x: dual-TC sharding only pays when each half-tile is large, so the
    #     split is gated on batch size (>1024 rows -> 1024-row tiles, i.e.
    #     >=512 rows per core under the "parallel" annotation).
    # Per-step VMEM at tb=1024 (double-buffered f32 in/out + f32 LN temps) is a
    # few MB -- far inside every generation's scoped VMEM default -- so the cap
    # is about grid-step amortization, not VMEM.
    if rows <= 1024:
        return rows
    return 1024


def prepare_params(params):
    """One-time (init-time) packing of PyTorch-layout params into kernel layout:
    bf16 MXU weights, lane-dense (128-padded) output layer, -1e30 bias on padded
    action lanes.  Hoisted out of actor_forward so the jitted forward issues no
    per-call cast / pad ops."""
    w1, b1, g1, bt1, w2, b2, g2, bt2, w3, b3 = params
    A = w3.shape[1]
    A_pad = _round_up(A, 128)
    w1b = w1.astype(jnp.bfloat16)
    w2b = w2.astype(jnp.bfloat16)
    w3b = jnp.pad(w3.astype(jnp.bfloat16), ((0, 0), (0, A_pad - A)))
    b3p = jnp.pad(b3.astype(jnp.float32), ((0, 0), (0, A_pad - A)),
                  constant_values=NEG_BIG)
    return (w1b, b1.astype(jnp.float32), g1.astype(jnp.float32),
            bt1.astype(jnp.float32),
            w2b, b2.astype(jnp.float32), g2.astype(jnp.float32),
            bt2.astype(jnp.float32),
            w3b, b3p)


def actor_forward(state, prepared, *, n_actions, batch_tile=None):
    """Fused actor MLP. state: (B, D_in) f32. Returns (B, n_actions) f32 probs."""
    B, D_in = state.shape
    w1b, b1, g1, bt1, w2b, b2, g2, bt2, w3b, b3p = prepared
    H1, H2 = w1b.shape[1], w2b.shape[1]
    A_pad = w3b.shape[1]

    tb = _pick_batch_tile(B, batch_tile)
    B_pad = _round_up(B, tb)
    # Pad only when the batch is ragged w.r.t. the tile; no cast pass here.
    x = state if B_pad == B else jnp.pad(state, ((0, B_pad - B), (0, 0)))

    full = lambda shp: pl.BlockSpec(shp, lambda i: (0, 0))

    cost = pl.CostEstimate(
        flops=2 * B_pad * (D_in * H1 + H1 * H2 + H2 * A_pad)
              + 12 * B_pad * (H1 + H2) + 4 * B_pad * A_pad,
        transcendentals=B_pad * A_pad + 2 * B_pad,
        bytes_accessed=4 * B_pad * (D_in + A_pad)
              + 2 * (D_in * H1 + H1 * H2 + H2 * A_pad)
              + 4 * (3 * H1 + 3 * H2 + A_pad),
    )

    out = pl.pallas_call(
        actor_kernel,
        out_shape=jax.ShapeDtypeStruct((B_pad, A_pad), jnp.float32),
        grid_spec=pltpu.PrefetchScalarGridSpec(
            num_scalar_prefetch=0,
            grid=(B_pad // tb,),
            in_specs=[
                pl.BlockSpec((tb, D_in), lambda i: (i, 0)),    # f32 state tile
                full((D_in, H1)), full((1, H1)), full((1, H1)), full((1, H1)),
                full((H1, H2)),  full((1, H2)), full((1, H2)), full((1, H2)),
                full((H2, A_pad)), full((1, A_pad)),
            ],
            out_specs=pl.BlockSpec((tb, A_pad), lambda i: (i, 0)),
        ),
        compiler_params=pltpu.CompilerParams(
            dimension_semantics=("parallel",)),
        cost_estimate=cost,
    )(x, w1b, b1, g1, bt1, w2b, b2, g2, bt2, w3b, b3p)

    return out[:B, :n_actions]


def init_params(key, d_in, h1, h2, n_actions):
    """Deterministic synthetic parameters (shapes match nn.Linear / nn.LayerNorm)."""
    ks = jax.random.split(key, 6)

    def linear(kw, kb, fan_in, fan_out):
        bound = 1.0 / jnp.sqrt(fan_in)
        w = jax.random.uniform(kw, (fan_in, fan_out), jnp.float32, -bound, bound)
        b = jax.random.uniform(kb, (1, fan_out), jnp.float32, -bound, bound)
        return w, b

    w1, b1 = linear(ks[0], ks[1], d_in, h1)
    w2, b2 = linear(ks[2], ks[3], h1, h2)
    w3, b3 = linear(ks[4], ks[5], h2, n_actions)
    # LayerNorm affine params: gamma=1, beta=0 (torch default init).
    g1, bt1 = jnp.ones((1, h1), jnp.float32), jnp.zeros((1, h1), jnp.float32)
    g2, bt2 = jnp.ones((1, h2), jnp.float32), jnp.zeros((1, h2), jnp.float32)
    return (w1, b1, g1, bt1, w2, b2, g2, bt2, w3, b3)


def reference_forward(state, params, match_kernel_precision=False):
    """Pure-JAX reference. match_kernel_precision mirrors the kernel's bf16 casts."""
    w1, b1, g1, bt1, w2, b2, g2, bt2, w3, b3 = params
    cast = (lambda t: t.astype(jnp.bfloat16)) if match_kernel_precision else (lambda t: t)
    h = jnp.dot(cast(state), cast(w1), preferred_element_type=jnp.float32) + b1
    h = jnp.maximum(_layernorm_f32(h, g1, bt1), 0.0)
    h = jnp.dot(cast(h), cast(w2), preferred_element_type=jnp.float32) + b2
    h = jnp.maximum(_layernorm_f32(h, g2, bt2), 0.0)
    logits = jnp.dot(cast(h), cast(w3), preferred_element_type=jnp.float32) + b3
    return jax.nn.softmax(logits, axis=-1)


if __name__ == "__main__":
    # Shapes consistent with ActorNetwork(n_actions=(16,), input_dims=(32,),
    # alpha=..., layer_1_dim=128, hidden_layer_dims=[128]).  B=64 -> single
    # grid step (no pointless tile split on 1-TC chips).
    B, D_IN, H1, H2, N_ACTIONS = 64, 32, 128, 128, 16

    key = jax.random.PRNGKey(0)
    k_state, k_params = jax.random.split(key)
    state = jax.random.normal(k_state, (B, D_IN), jnp.float32)
    params = init_params(k_params, D_IN, H1, H2, N_ACTIONS)

    # One-time parameter packing (cast/pad hoisted out of the jitted forward).
    prepared = prepare_params(params)

    fwd = jax.jit(actor_forward, static_argnames=("n_actions", "batch_tile"))
    probs = jax.block_until_ready(fwd(state, prepared, n_actions=N_ACTIONS))

    assert probs.shape == (B, N_ACTIONS)
    # Exact f32 divide in the kernel -> rows sum to 1 within f32 rounding.
    assert jnp.allclose(jnp.sum(probs, axis=-1), 1.0, atol=1e-4)

    # Reference with the kernel's precision (bf16 matmul operands, f32 accum).
    ref_matched = reference_forward(state, params, match_kernel_precision=True)
    assert jnp.allclose(probs, ref_matched, atol=5e-3, rtol=5e-3)

    # Full-f32 module reference (looser: bf16 storage/compute rounding).
    ref_f32 = reference_forward(state, params, match_kernel_precision=False)
    assert jnp.allclose(probs, ref_f32, atol=2e-2)

    print("KERNEL_OK")
</pallas_src>

<mosaic_0001>
module attributes {stable_mosaic.version = 11 : i64} {
  func.func @actor_kernel(%arg0: i32, %arg1: memref<64x32xf32, #tpu.memory_space<vmem>>, %arg2: memref<32x128xbf16, #tpu.memory_space<vmem>>, %arg3: memref<1x128xf32, #tpu.memory_space<vmem>>, %arg4: memref<1x128xf32, #tpu.memory_space<vmem>>, %arg5: memref<1x128xf32, #tpu.memory_space<vmem>>, %arg6: memref<128x128xbf16, #tpu.memory_space<vmem>>, %arg7: memref<1x128xf32, #tpu.memory_space<vmem>>, %arg8: memref<1x128xf32, #tpu.memory_space<vmem>>, %arg9: memref<1x128xf32, #tpu.memory_space<vmem>>, %arg10: memref<128x128xbf16, #tpu.memory_space<vmem>>, %arg11: memref<1x128xf32, #tpu.memory_space<vmem>>, %arg12: memref<64x128xf32, #tpu.memory_space<vmem>>) attributes {dimension_semantics = [#tpu.dimension_semantics<parallel>], iteration_bounds = array<i64: 1>, scalar_prefetch = 0 : i64, scratch_operands = 0 : i64, tpu.core_type = #tpu.core_type<tc>, window_params = [{transform_indices = @transform_0, window_bounds = array<i64: 64, 32>}, {pipeline_mode = #tpu.pipeline_mode<synchronous>, transform_indices = @transform_1, window_bounds = array<i64: 32, 128>}, {pipeline_mode = #tpu.pipeline_mode<synchronous>, transform_indices = @transform_2, window_bounds = array<i64: 1, 128>}, {pipeline_mode = #tpu.pipeline_mode<synchronous>, transform_indices = @transform_3, window_bounds = array<i64: 1, 128>}, {pipeline_mode = #tpu.pipeline_mode<synchronous>, transform_indices = @transform_4, window_bounds = array<i64: 1, 128>}, {pipeline_mode = #tpu.pipeline_mode<synchronous>, transform_indices = @transform_5, window_bounds = array<i64: 128, 128>}, {pipeline_mode = #tpu.pipeline_mode<synchronous>, transform_indices = @transform_6, window_bounds = array<i64: 1, 128>}, {pipeline_mode = #tpu.pipeline_mode<synchronous>, transform_indices = @transform_7, window_bounds = array<i64: 1, 128>}, {pipeline_mode = #tpu.pipeline_mode<synchronous>, transform_indices = @transform_8, window_bounds = array<i64: 1, 128>}, {pipeline_mode = #tpu.pipeline_mode<synchronous>, transform_indices = @transform_9, window_bounds = array<i64: 128, 128>}, {pipeline_mode = #tpu.pipeline_mode<synchronous>, transform_indices = @transform_10, window_bounds = array<i64: 1, 128>}, {transform_indices = @transform_11, window_bounds = array<i64: 64, 128>}]} {
    %c0 = arith.constant 0 : index
    %c0_0 = arith.constant 0 : index
    %0 = vector.load %arg1[%c0, %c0_0] : memref<64x32xf32, #tpu.memory_space<vmem>>, vector<64x32xf32>
    %1 = arith.truncf %0 : vector<64x32xf32> to vector<64x32xbf16>
    %c0_1 = arith.constant 0 : index
    %c0_2 = arith.constant 0 : index
    %2 = vector.load %arg2[%c0_1, %c0_2] : memref<32x128xbf16, #tpu.memory_space<vmem>>, vector<32x128xbf16>
    %cst = arith.constant dense<0.000000e+00> : vector<64x128xf32>
    %3 = tpu.matmul %1, %2, %cst {dimension_numbers = #tpu.dot_dimension_numbers<[1], [0], [0], [1], [0, 0, 1, 1], [], []>} : vector<64x32xbf16>, vector<32x128xbf16>, vector<64x128xf32> -> vector<64x128xf32>
    %c0_3 = arith.constant 0 : index
    %c0_4 = arith.constant 0 : index
    %4 = vector.load %arg3[%c0_3, %c0_4] : memref<1x128xf32, #tpu.memory_space<vmem>>, vector<1x128xf32>
    %5 = vector.broadcast %4 : vector<1x128xf32> to vector<64x128xf32>
    %6 = arith.addf %3, %5 : vector<64x128xf32>
    %c0_5 = arith.constant 0 : index
    %c0_6 = arith.constant 0 : index
    %7 = vector.load %arg4[%c0_5, %c0_6] : memref<1x128xf32, #tpu.memory_space<vmem>>, vector<1x128xf32>
    %c0_7 = arith.constant 0 : index
    %c0_8 = arith.constant 0 : index
    %8 = vector.load %arg5[%c0_7, %c0_8] : memref<1x128xf32, #tpu.memory_space<vmem>>, vector<1x128xf32>
    %cst_9 = arith.constant dense<0.000000e+00> : vector<64xf32>
    %9 = vector.multi_reduction <add>, %6, %cst_9 [1] : vector<64x128xf32> to vector<64xf32>
    %10 = vector.shape_cast %9 : vector<64xf32> to vector<64x1xf32>
    %cst_10 = arith.constant 1.280000e+02 : f32
    %11 = vector.broadcast %cst_10 : f32 to vector<64x1xf32>
    %12 = arith.divf %10, %11 : vector<64x1xf32>
    %13 = arith.mulf %6, %6 : vector<64x128xf32>
    %cst_11 = arith.constant dense<0.000000e+00> : vector<64xf32>
    %14 = vector.multi_reduction <add>, %13, %cst_11 [1] : vector<64x128xf32> to vector<64xf32>
    %15 = vector.shape_cast %14 : vector<64xf32> to vector<64x1xf32>
    %cst_12 = arith.constant 1.280000e+02 : f32
    %16 = vector.broadcast %cst_12 : f32 to vector<64x1xf32>
    %17 = arith.divf %15, %16 : vector<64x1xf32>
    %18 = arith.mulf %12, %12 : vector<64x1xf32>
    %19 = arith.subf %17, %18 : vector<64x1xf32>
    %cst_13 = arith.constant 0.000000e+00 : f32
    %20 = vector.broadcast %cst_13 : f32 to vector<64x1xf32>
    %21 = arith.maximumf %19, %20 : vector<64x1xf32>
    %cst_14 = arith.constant 9.99999974E-6 : f32
    %22 = vector.broadcast %cst_14 : f32 to vector<64x1xf32>
    %23 = arith.addf %21, %22 : vector<64x1xf32>
    %24 = math.rsqrt %23 : vector<64x1xf32>
    %25 = vector.broadcast %12 : vector<64x1xf32> to vector<64x128xf32>
    %26 = arith.subf %6, %25 : vector<64x128xf32>
    %27 = vector.broadcast %24 : vector<64x1xf32> to vector<64x128xf32>
    %28 = arith.mulf %26, %27 : vector<64x128xf32>
    %29 = vector.broadcast %7 : vector<1x128xf32> to vector<64x128xf32>
    %30 = arith.mulf %28, %29 : vector<64x128xf32>
    %31 = vector.broadcast %8 : vector<1x128xf32> to vector<64x128xf32>
    %32 = arith.addf %30, %31 : vector<64x128xf32>
    %cst_15 = arith.constant 0.000000e+00 : f32
    %33 = vector.broadcast %cst_15 : f32 to vector<64x128xf32>
    %34 = arith.maximumf %32, %33 : vector<64x128xf32>
    %35 = arith.truncf %34 : vector<64x128xf32> to vector<64x128xbf16>
    %c0_16 = arith.constant 0 : index
    %c0_17 = arith.constant 0 : index
    %36 = vector.load %arg6[%c0_16, %c0_17] : memref<128x128xbf16, #tpu.memory_space<vmem>>, vector<128x128xbf16>
    %cst_18 = arith.constant dense<0.000000e+00> : vector<64x128xf32>
    %37 = tpu.matmul %35, %36, %cst_18 {dimension_numbers = #tpu.dot_dimension_numbers<[1], [0], [0], [1], [0, 0, 1, 1], [], []>} : vector<64x128xbf16>, vector<128x128xbf16>, vector<64x128xf32> -> vector<64x128xf32>
    %c0_19 = arith.constant 0 : index
    %c0_20 = arith.constant 0 : index
    %38 = vector.load %arg7[%c0_19, %c0_20] : memref<1x128xf32, #tpu.memory_space<vmem>>, vector<1x128xf32>
    %39 = vector.broadcast %38 : vector<1x128xf32> to vector<64x128xf32>
    %40 = arith.addf %37, %39 : vector<64x128xf32>
    %c0_21 = arith.constant 0 : index
    %c0_22 = arith.constant 0 : index
    %41 = vector.load %arg8[%c0_21, %c0_22] : memref<1x128xf32, #tpu.memory_space<vmem>>, vector<1x128xf32>
    %c0_23 = arith.constant 0 : index
    %c0_24 = arith.constant 0 : index
    %42 = vector.load %arg9[%c0_23, %c0_24] : memref<1x128xf32, #tpu.memory_space<vmem>>, vector<1x128xf32>
    %cst_25 = arith.constant dense<0.000000e+00> : vector<64xf32>
    %43 = vector.multi_reduction <add>, %40, %cst_25 [1] : vector<64x128xf32> to vector<64xf32>
    %44 = vector.shape_cast %43 : vector<64xf32> to vector<64x1xf32>
    %cst_26 = arith.constant 1.280000e+02 : f32
    %45 = vector.broadcast %cst_26 : f32 to vector<64x1xf32>
    %46 = arith.divf %44, %45 : vector<64x1xf32>
    %47 = arith.mulf %40, %40 : vector<64x128xf32>
    %cst_27 = arith.constant dense<0.000000e+00> : vector<64xf32>
    %48 = vector.multi_reduction <add>, %47, %cst_27 [1] : vector<64x128xf32> to vector<64xf32>
    %49 = vector.shape_cast %48 : vector<64xf32> to vector<64x1xf32>
    %cst_28 = arith.constant 1.280000e+02 : f32
    %50 = vector.broadcast %cst_28 : f32 to vector<64x1xf32>
    %51 = arith.divf %49, %50 : vector<64x1xf32>
    %52 = arith.mulf %46, %46 : vector<64x1xf32>
    %53 = arith.subf %51, %52 : vector<64x1xf32>
    %cst_29 = arith.constant 0.000000e+00 : f32
    %54 = vector.broadcast %cst_29 : f32 to vector<64x1xf32>
    %55 = arith.maximumf %53, %54 : vector<64x1xf32>
    %cst_30 = arith.constant 9.99999974E-6 : f32
    %56 = vector.broadcast %cst_30 : f32 to vector<64x1xf32>
    %57 = arith.addf %55, %56 : vector<64x1xf32>
    %58 = math.rsqrt %57 : vector<64x1xf32>
    %59 = vector.broadcast %46 : vector<64x1xf32> to vector<64x128xf32>
    %60 = arith.subf %40, %59 : vector<64x128xf32>
    %61 = vector.broadcast %58 : vector<64x1xf32> to vector<64x128xf32>
    %62 = arith.mulf %60, %61 : vector<64x128xf32>
    %63 = vector.broadcast %41 : vector<1x128xf32> to vector<64x128xf32>
    %64 = arith.mulf %62, %63 : vector<64x128xf32>
    %65 = vector.broadcast %42 : vector<1x128xf32> to vector<64x128xf32>
    %66 = arith.addf %64, %65 : vector<64x128xf32>
    %cst_31 = arith.constant 0.000000e+00 : f32
    %67 = vector.broadcast %cst_31 : f32 to vector<64x128xf32>
    %68 = arith.maximumf %66, %67 : vector<64x128xf32>
    %69 = arith.truncf %68 : vector<64x128xf32> to vector<64x128xbf16>
    %c0_32 = arith.constant 0 : index
    %c0_33 = arith.constant 0 : index
    %70 = vector.load %arg10[%c0_32, %c0_33] : memref<128x128xbf16, #tpu.memory_space<vmem>>, vector<128x128xbf16>
    %cst_34 = arith.constant dense<0.000000e+00> : vector<64x128xf32>
    %71 = tpu.matmul %69, %70, %cst_34 {dimension_numbers = #tpu.dot_dimension_numbers<[1], [0], [0], [1], [0, 0, 1, 1], [], []>} : vector<64x128xbf16>, vector<128x128xbf16>, vector<64x128xf32> -> vector<64x128xf32>
    %c0_35 = arith.constant 0 : index
    %c0_36 = arith.constant 0 : index
    %72 = vector.load %arg11[%c0_35, %c0_36] : memref<1x128xf32, #tpu.memory_space<vmem>>, vector<1x128xf32>
    %73 = vector.broadcast %72 : vector<1x128xf32> to vector<64x128xf32>
    %74 = arith.addf %71, %73 : vector<64x128xf32>
    %cst_37 = arith.constant dense<0xFF800000> : vector<64xf32>
    %75 = vector.multi_reduction <maximumf>, %74, %cst_37 [1] : vector<64x128xf32> to vector<64xf32>
    %76 = vector.shape_cast %75 : vector<64xf32> to vector<64x1xf32>
    %77 = vector.broadcast %76 : vector<64x1xf32> to vector<64x128xf32>
    %78 = arith.subf %74, %77 : vector<64x128xf32>
    %79 = math.exp %78 : vector<64x128xf32>
    %cst_38 = arith.constant dense<0.000000e+00> : vector<64xf32>
    %80 = vector.multi_reduction <add>, %79, %cst_38 [1] : vector<64x128xf32> to vector<64xf32>
    %81 = vector.shape_cast %80 : vector<64xf32> to vector<64x1xf32>
    %82 = vector.broadcast %81 : vector<64x1xf32> to vector<64x128xf32>
    %83 = arith.divf %79, %82 : vector<64x128xf32>
    %c0_39 = arith.constant 0 : index
    %c0_40 = arith.constant 0 : index
    %84 = vector.load %arg12[%c0_39, %c0_40] : memref<64x128xf32, #tpu.memory_space<vmem>>, vector<64x128xf32>
    tpu.vector_store %arg12[%c0_39, %c0_40], %83 {strides = array<i32>} : memref<64x128xf32, #tpu.memory_space<vmem>>, vector<64x128xf32>,
    return
  }
  func.func @transform_0(%arg0: i32) -> (i32, i32) {
    %c0_i32 = arith.constant 0 : i32
    %c0_i32_0 = arith.constant 0 : i32
    return %arg0, %c0_i32 : i32, i32
  }
  func.func @transform_1(%arg0: i32) -> (i32, i32) {
    %c0_i32 = arith.constant 0 : i32
    %c0_i32_0 = arith.constant 0 : i32
    %c0_i32_1 = arith.constant 0 : i32
    return %c0_i32, %c0_i32_0 : i32, i32
  }
  func.func @transform_2(%arg0: i32) -> (i32, i32) {
    %c0_i32 = arith.constant 0 : i32
    %c0_i32_0 = arith.constant 0 : i32
    %c0_i32_1 = arith.constant 0 : i32
    return %c0_i32, %c0_i32_0 : i32, i32
  }
  func.func @transform_3(%arg0: i32) -> (i32, i32) {
    %c0_i32 = arith.constant 0 : i32
    %c0_i32_0 = arith.constant 0 : i32
    %c0_i32_1 = arith.constant 0 : i32
    return %c0_i32, %c0_i32_0 : i32, i32
  }
  func.func @transform_4(%arg0: i32) -> (i32, i32) {
    %c0_i32 = arith.constant 0 : i32
    %c0_i32_0 = arith.constant 0 : i32
    %c0_i32_1 = arith.constant 0 : i32
    return %c0_i32, %c0_i32_0 : i32, i32
  }
  func.func @transform_5(%arg0: i32) -> (i32, i32) {
    %c0_i32 = arith.constant 0 : i32
    %c0_i32_0 = arith.constant 0 : i32
    %c0_i32_1 = arith.constant 0 : i32
    return %c0_i32, %c0_i32_0 : i32, i32
  }
  func.func @transform_6(%arg0: i32) -> (i32, i32) {
    %c0_i32 = arith.constant 0 : i32
    %c0_i32_0 = arith.constant 0 : i32
    %c0_i32_1 = arith.constant 0 : i32
    return %c0_i32, %c0_i32_0 : i32, i32
  }
  func.func @transform_7(%arg0: i32) -> (i32, i32) {
    %c0_i32 = arith.constant 0 : i32
    %c0_i32_0 = arith.constant 0 : i32
    %c0_i32_1 = arith.constant 0 : i32
    return %c0_i32, %c0_i32_0 : i32, i32
  }
  func.func @transform_8(%arg0: i32) -> (i32, i32) {
    %c0_i32 = arith.constant 0 : i32
    %c0_i32_0 = arith.constant 0 : i32
    %c0_i32_1 = arith.constant 0 : i32
    return %c0_i32, %c0_i32_0 : i32, i32
  }
  func.func @transform_9(%arg0: i32) -> (i32, i32) {
    %c0_i32 = arith.constant 0 : i32
    %c0_i32_0 = arith.constant 0 : i32
    %c0_i32_1 = arith.constant 0 : i32
    return %c0_i32, %c0_i32_0 : i32, i32
  }
  func.func @transform_10(%arg0: i32) -> (i32, i32) {
    %c0_i32 = arith.constant 0 : i32
    %c0_i32_0 = arith.constant 0 : i32
    %c0_i32_1 = arith.constant 0 : i32
    return %c0_i32, %c0_i32_0 : i32, i32
  }
  func.func @transform_11(%arg0: i32) -> (i32, i32) {
    %c0_i32 = arith.constant 0 : i32
    %c0_i32_0 = arith.constant 0 : i32
    return %arg0, %c0_i32 : i32, i32
  }
}

</mosaic_0001>

<bundles_post_ra>
// kernel: actor_forward.1
= control target key start
LH: loop header
LB: loop body
LE: loop exit
PB: predicated region body
PF: predicated region fallthrough
CT: control target
= control target key end

     0   :  { %16 = vsyncpa [#allocation3], 0  ;;  %s1172_s20 = smov [#allocation2]   ;;  %s1173_s22 = smov 64   ;;  %s1623_s0 = inlined_call_operand.vmem [shape: f32[64,32], index: 0, kind: input, shape index: {}]   ;;  %s1624_s1 = inlined_call_operand.vmem [shape: bf16[32,128], index: 1, kind: input, shape index: {}]   ;;  %s1625_s2 = inlined_call_operand.vmem [shape: f32[1,128], index: 2, kind: input, shape index: {}]   ;;  %s1626_s3 = inlined_call_operand.vmem [shape: f32[1,128], index: 3, kind: input, shape index: {}]   ;;  %s1627_s4 = inlined_call_operand.vmem [shape: f32[1,128], index: 4, kind: input, shape index: {}]   ;;  %s1628_s5 = inlined_call_operand.vmem [shape: bf16[128,128], index: 5, kind: input, shape index: {}]   ;;  %s1629_s6 = inlined_call_operand.vmem [shape: f32[1,128], index: 6, kind: input, shape index: {}]   ;;  %s1630_s7 = inlined_call_operand.vmem [shape: f32[1,128], index: 7, kind: input, shape index: {}]   ;;  %s1631_s8 = inlined_call_operand.vmem [shape: f32[1,128], index: 8, kind: input, shape index: {}]   ;;  %s1632_s9 = inlined_call_operand.hbm [shape: bf16[128,128], index: 9, kind: input, shape index: {}]   ;;  %s1633_s10 = inlined_call_operand.vmem [shape: f32[1,128], index: 10, kind: input, shape index: {}]   ;;  %s1634_s11 = inlined_call_operand.vmem [shape: f32[64,128], index: 11, kind: output, shape index: {}]  }
   0x1   :  { %s39_s19 = sshll.u32 %s1632_s9, 4  ;;  %s41_s21 = sshll.u32 %s1172_s20, 4  ;;  %s40_s19 = int_to_ptr.hbm [resolvable:$true] %s39_s19  ;;  %s42_s21 = int_to_ptr.vmem [resolvable:$true] %s41_s21 }
   0x2   :  { %s1174_s23 = smov 4  }
   0x3   :  { %47 = dma.hbm_to_vmem [thread:$0]  %s40_s19, 1024, %s42_s21, [#allocation3], %s1173_s22, %s1173_s22, %s1174_s23  }
   0x4   :  { %1170 = dma.done.wait [#allocation3], 1024  }
   0x5   :  { %1171 = vsyncadd [#allocation3], 4294966272  ;;  %v1036_v0 = vld [vmem:[%s1624_s1 + $0x8] sm:$0xff]  ;;  %v1035_v1 = vld [vmem:[%s1624_s1] sm:$0xff]  ;;  %vm87_vm0 = vcmask 261120   ;;  %v1175_v39 = vmov 128.0  }
   0x6   :  { %106 = vmatpush.bf16.msra.mxu0 %v1036_v0  ;;  %v55_v2 = vld [vmem:[%s1623_s0] sm:$0xff]  ;;  %v56_v3 = vld [vmem:[%s1623_s0 + $0x8] sm:$0xff]  ;;  %v57_v5 = vld [vmem:[%s1623_s0 + $0x10] sm:$0xff]  ;;  %1080 = vrcp.f32 %v1175_v39 }
   0x7   :  { %v63_v4 = vpack.c.bf16 %v56_v3, %v55_v2  ;;  %v58_v6 = vld [vmem:[%s1623_s0 + $0x18] sm:$0xff]  ;;  %v59_v8 = vld [vmem:[%s1623_s0 + $0x20] sm:$0xff]  ;;  %v60_v9 = vld [vmem:[%s1623_s0 + $0x28] sm:$0xff] }
   0x8   :  { %v64_v7 = vpack.c.bf16 %v58_v6, %v57_v5  ;;  %v65_v10 = vpack.c.bf16 %v60_v9, %v59_v8  ;;  %v61_v11 = vld [vmem:[%s1623_s0 + $0x30] sm:$0xff]  ;;  %v62_v12 = vld [vmem:[%s1623_s0 + $0x38] sm:$0xff]  ;;  %v1073_v16 = vld [vmem:[%s1625_s2] ss:$0 sm:$0xff] }
   0x9   :  { %v66_v13 = vpack.c.bf16 %v62_v12, %v61_v11  ;;  %v1044_v42 = vld [vmem:[%s1628_s5 + $0x38] sm:$0xff]  ;;  %v1043_v44 = vld [vmem:[%s1628_s5 + $0x30] sm:$0xff]  ;;  %v1042_v46 = vld [vmem:[%s1628_s5 + $0x28] sm:$0xff] }
   0xa   :  { %107 = vmatpush.bf16.msra.mxu0 %v1035_v1  ;;  %1053 = vmatpush.bf16.msra.mxu3 %v1044_v42  ;;  %v1041_v48 = vld [vmem:[%s1628_s5 + $0x20] sm:$0xff]  ;;  %v1040_v50 = vld [vmem:[%s1628_s5 + $0x18] sm:$0xff]  ;;  %v1039_v56 = vld [vmem:[%s1628_s5 + $0x10] sm:$0xff] }
   0xb   :  { %424 = vmatpush.bf16.msra.mxu1 %v1044_v42  ;;  %v1038_v59 = vld [vmem:[%s1628_s5 + $0x8] sm:$0xff]  ;;  %v1037_v1 = vld [vmem:[%s1628_s5] sm:$0xff] }
   0xc   :  { %v1081_v40 = vpop.eup %1080 }
   0xd   :  { %967 = vmatmul.msk.bf16.vlgmr.msra.gmra.mxu0 %vm87_vm0, %v63_v4  ;;  %v148_v41 = vmul.f32 128.0, %v1081_v40  ;;  %vm152_vm1 = vweird.f32 %v1081_v40 }
   0xe   :  { %1054 = vmatpush.bf16.msra.mxu3 %v1043_v44 }
   0xf   :  { %v149_v43 = vsub.f32 1.0, %v148_v41  ;;  %425 = vmatpush.bf16.msra.mxu1 %v1043_v44 }
  0x11   :  { %v150_v45 = vmul.f32 %v1081_v40, %v149_v43 }
  0x12   :  { %1055 = vmatpush.bf16.msra.mxu3 %v1042_v46 }
  0x13   :  { %426 = vmatpush.bf16.msra.mxu1 %v1042_v46  ;;  %v151_v47 = vadd.f32 %v1081_v40, %v150_v45  ;;  %v1370_v46 = vld [vmem:[%s1626_s3] ss:$0 sm:$0xff] }
  0x15   :  { %v1324_v49 = vsel %vm152_vm1, %v1081_v40, %v151_v47 }
  0x16   :  { %1056 = vmatpush.bf16.msra.mxu3 %v1041_v48 }
  0x17   :  { %427 = vmatpush.bf16.msra.mxu1 %v1041_v48 }
  0x1a   :  { %1057 = vmatpush.bf16.msra.mxu3 %v1040_v50 }
  0x1b   :  { %428 = vmatpush.bf16.msra.mxu1 %v1040_v50 }
  0x1d   :  { %968 = vmatmul.msk.bf16.gmra.mxu0 %vm87_vm0, %v64_v7 }
  0x1e   :  { %1058 = vmatpush.bf16.msra.mxu3 %v1039_v56 }
  0x1f   :  { %429 = vmatpush.bf16.msra.mxu1 %v1039_v56 }
  0x22   :  { %1059 = vmatpush.bf16.msra.mxu3 %v1038_v59 }
  0x23   :  { %430 = vmatpush.bf16.msra.mxu1 %v1038_v59 }
  0x26   :  { %1060 = vmatpush.bf16.msra.mxu3 %v1037_v1 }
  0x27   :  { %431 = vmatpush.bf16.msra.mxu1 %v1037_v1 }
  0x2d   :  { %969 = vmatmul.msk.bf16.gmra.mxu0 %vm87_vm0, %v65_v10 }
  0x3d   :  { %970 = vmatmul.msk.bf16.gmra.mxu0 %vm87_vm0, %v66_v13 }
  0x8a   :  { %v109_v14 = vpop.f32.mrf.mxu0 }
  0x8b   :  { %v1305_v36 = vadd.f32 %v1073_v16, %v109_v14 }
  0x8d   :  { %v162_v37 = vmul.f32 %v1305_v36, %v1305_v36 }
  0x92   :  { %v111_v15 = vpop.f32.mrf.mxu0 }
  0x93   :  { %v1299_v34 = vadd.f32 %v1073_v16, %v111_v15 }
  0x95   :  { %v163_v38 = vmul.f32 %v1299_v34, %v1299_v34 }
  0x9a   :  { %v114_v17 = vpop.f32.mrf.mxu0 }
  0x9b   :  { %v1272_v18 = vadd.f32 %v1073_v16, %v114_v17 }
  0x9d   :  { %135 = vadd.xlane.f32.xlu0 %v1272_v18  ;;  %v164_v19 = vmul.f32 %v1272_v18, %v1272_v18 }
  0x9f   :  { %174 = vadd.xlane.f32.xlu1 %v164_v19 }
  0xa2   :  { %v116_v20 = vpop.f32.mrf.mxu0 }
  0xa3   :  { %v1277_v21 = vadd.f32 %v1073_v16, %v116_v20 }
  0xa5   :  { %137 = vadd.xlane.f32.xlu0 %v1277_v21  ;;  %v165_v22 = vmul.f32 %v1277_v21, %v1277_v21 }
  0xa7   :  { %176 = vadd.xlane.f32.xlu1 %v165_v22 }
  0xaa   :  { %v119_v23 = vpop.f32.mrf.mxu0 }
  0xab   :  { %v1282_v24 = vadd.f32 %v1073_v16, %v119_v23 }
  0xad   :  { %139 = vadd.xlane.f32.xlu2 %v1282_v24  ;;  %v166_v25 = vmul.f32 %v1282_v24, %v1282_v24 }
  0xaf   :  { %178 = vadd.xlane.f32.xlu0 %v166_v25 }
  0xb2   :  { %v121_v26 = vpop.f32.mrf.mxu0 }
  0xb3   :  { %v1287_v27 = vadd.f32 %v1073_v16, %v121_v26 }
  0xb5   :  { %141 = vadd.xlane.f32.xlu2 %v1287_v27  ;;  %v167_v28 = vmul.f32 %v1287_v27, %v1287_v27 }
  0xb7   :  { %180 = vadd.xlane.f32.xlu1 %v167_v28 }
  0xba   :  { %v124_v29 = vpop.f32.mrf.mxu0 }
  0xbb   :  { %v1292_v30 = vadd.f32 %v1073_v16, %v124_v29 }
  0xbd   :  { %143 = vadd.xlane.f32.xlu2 %v1292_v30  ;;  %v168_v31 = vmul.f32 %v1292_v30, %v1292_v30 }
  0xbf   :  { %182 = vadd.xlane.f32.xlu1 %v168_v31 }
  0xc2   :  { %v126_v32 = vpop.f32.mrf.mxu0 }
  0xc3   :  { %v1297_v33 = vadd.f32 %v1073_v16, %v126_v32 }
  0xc5   :  { %145 = vadd.xlane.f32.xlu0 %v1297_v33  ;;  %v169_v35 = vmul.f32 %v1297_v33, %v1297_v33 }
  0xc7   :  { %184 = vadd.xlane.f32.xlu2 %v169_v35  ;;  %133 = vadd.xlane.f32.xlu1 %v1299_v34 }
  0xcd   :  { %131 = vadd.xlane.f32.xlu0 %v1305_v36 }
  0xcf   :  { %170 = vadd.xlane.f32.xlu2 %v162_v37 }
  0xd5   :  { %172 = vadd.xlane.f32.xlu0 %v163_v38 }
 0x110   :  { %v136_v51 = vpop.xlane.xlu0 %135 }
 0x111   :  { %v1330_v52 = vmul.f32 %v1324_v49, %v136_v51 }
 0x112   :  { %v175_v53 = vpop.xlane.xlu1 %174 }
 0x113   :  { %v196_v54 = vmul.f32 %v1330_v52, %v1330_v52  ;;  %v188_v55 = vmul.f32 %v175_v53, %v1324_v49  ;;  %v308_v38 = vsub.f32 %v1272_v18, %v1330_v52 }
 0x115   :  { %v204_v57 = vsub.f32 %v188_v55, %v196_v54 }
 0x117   :  { %v212_v58 = vmax.f32 %v204_v57, 0.0 }
 0x118   :  { %v138_v60 = vpop.xlane.xlu0 %137 }
 0x119   :  { %v220_v61 = vadd.f32 1e-05, %v212_v58  ;;  %v1342_v62 = vmul.f32 %v1324_v49, %v138_v60  ;;  %v1381_v58 = vld [vmem:[%s1627_s4] ss:$0 sm:$0xff] }
 0x11a   :  { %v177_v63 = vpop.xlane.xlu1 %176 }
 0x11b   :  { %1082 = vrsqrt.f32 %v220_v61  ;;  %v197_v0 = vmul.f32 %v1342_v62, %v1342_v62  ;;  %v189_v2 = vmul.f32 %v177_v63, %v1324_v49  ;;  %vm252_vm3 = vweird.f32 %v220_v61 }
 0x11c   :  { %v309_v53 = vsub.f32 %v1277_v21, %v1342_v62 }
 0x11d   :  { %v205_v3 = vsub.f32 %v189_v2, %v197_v0 }
 0x11f   :  { %v213_v4 = vmax.f32 %v205_v3, 0.0 }
 0x120   :  { %v140_v5 = vpop.xlane.xlu2 %139 }
 0x121   :  { %v1083_v6 = vpop.eup %1082  ;;  %v1351_v7 = vmul.f32 %v1324_v49, %v140_v5  ;;  %v221_v9 = vadd.f32 1e-05, %v213_v4 }
 0x122   :  { %v247_v8 = vmul.f32 %v1083_v6, %v220_v61  ;;  %v179_v10 = vpop.xlane.xlu0 %178  ;;  %vm253_vm2 = vweird.f32 %v1083_v6 }
 0x123   :  { %v198_v11 = vmul.f32 %v1351_v7, %v1351_v7  ;;  %v190_v12 = vmul.f32 %v179_v10, %v1324_v49  ;;  %1084 = vrsqrt.f32 %v221_v9  ;;  %vm254_vm4 = vmor %vm252_vm3, %vm253_vm2  ;;  %vm262_vm6 = vweird.f32 %v221_v9 }
 0x124   :  { %v248_v13 = vmul.f32 %v1083_v6, %v247_v8 }
 0x125   :  { %v206_v14 = vsub.f32 %v190_v12, %v198_v11 }
 0x126   :  { %v249_v15 = vmul.f32 0.5, %v248_v13 }
 0x127   :  { %v214_v16 = vmax.f32 %v206_v14, 0.0 }
 0x128   :  { %v250_v17 = vsub.f32 1.5, %v249_v15  ;;  %v142_v19 = vpop.xlane.xlu2 %141  ;;  %v310_v15 = vsub.f32 %v1282_v24, %v1351_v7 }
 0x129   :  { %v222_v20 = vadd.f32 1e-05, %v214_v16  ;;  %v1357_v22 = vmul.f32 %v1324_v49, %v142_v19  ;;  %v1085_v23 = vpop.eup %1084 }
 0x12a   :  { %v251_v25 = vmul.f32 %v1083_v6, %v250_v17  ;;  %v181_v26 = vpop.xlane.xlu1 %180  ;;  %v257_v28 = vmul.f32 %v1085_v23, %v221_v9  ;;  %vm263_vm5 = vweird.f32 %v1085_v23 }
 0x12b   :  { %1086 = vrsqrt.f32 %v222_v20  ;;  %v199_v29 = vmul.f32 %v1357_v22, %v1357_v22  ;;  %v191_v31 = vmul.f32 %v181_v26, %v1324_v49  ;;  %vm264_vm7 = vmor %vm262_vm6, %vm263_vm5  ;;  %vm272_vm9 = vweird.f32 %v222_v20 }
 0x12c   :  { %v258_v32 = vmul.f32 %v1085_v23, %v257_v28  ;;  %v255_v37 = vsel %vm254_vm4, %v1083_v6, %v251_v25 }
 0x12d   :  { %v207_v35 = vsub.f32 %v191_v31, %v199_v29  ;;  %v316_v45 = vmul.f32 %v308_v38, %v255_v37 }
 0x12e   :  { %v259_v39 = vmul.f32 0.5, %v258_v32 }
 0x12f   :  { %v215_v40 = vmax.f32 %v207_v35, 0.0  ;;  %v327_v57 = vmul.f32 %v1370_v46, %v316_v45 }
 0x130   :  { %v144_v41 = vpop.xlane.xlu2 %143  ;;  %v260_v43 = vsub.f32 1.5, %v259_v39  ;;  %v311_v39 = vsub.f32 %v1287_v27, %v1357_v22 }
 0x131   :  { %v1087_v42 = vpop.eup %1086  ;;  %v1365_v44 = vmul.f32 %v1324_v49, %v144_v41  ;;  %v223_v48 = vadd.f32 1e-05, %v215_v40  ;;  %v338_v2 = vadd.f32 %v1381_v58, %v327_v57 }
 0x132   :  { %v267_v47 = vmul.f32 %v1087_v42, %v222_v20  ;;  %v183_v50 = vpop.xlane.xlu1 %182  ;;  %v261_v51 = vmul.f32 %v1085_v23, %v260_v43  ;;  %vm273_vm8 = vweird.f32 %v1087_v42 }
 0x133   :  { %v200_v18 = vmul.f32 %v1365_v44, %v1365_v44  ;;  %v192_v52 = vmul.f32 %v183_v50, %v1324_v49  ;;  %1088 = vrsqrt.f32 %v223_v48  ;;  %vm274_vm10 = vmor %vm272_vm9, %vm273_vm8  ;;  %v346_v12 = vmax.f32 %v338_v2, 0.0 }
 0x134   :  { %v268_v54 = vmul.f32 %v1087_v42, %v267_v47  ;;  %v265_v56 = vsel %vm264_vm7, %v1085_v23, %v261_v51  ;;  %vm282_vm12 = vweird.f32 %v223_v48  ;;  %v312_v2 = vsub.f32 %v1292_v30, %v1365_v44 }
 0x135   :  { %v208_v55 = vsub.f32 %v192_v52, %v200_v18  ;;  %v317_v60 = vmul.f32 %v309_v53, %v265_v56 }
 0x136   :  { %v269_v59 = vmul.f32 0.5, %v268_v54 }
 0x137   :  { %v216_v61 = vmax.f32 %v208_v55, 0.0  ;;  %v328_v1 = vmul.f32 %v1370_v46, %v317_v60 }
 0x138   :  { %v270_v63 = vsub.f32 1.5, %v269_v59  ;;  %v146_v0 = vpop.xlane.xlu0 %145 }
 0x139   :  { %v224_v21 = vadd.f32 1e-05, %v216_v61  ;;  %v1385_v62 = vmul.f32 %v1324_v49, %v146_v0  ;;  %v1089_v3 = vpop.eup %1088  ;;  %v339_v6 = vadd.f32 %v1381_v58, %v328_v1 }
 0x13a   :  { %v271_v4 = vmul.f32 %v1087_v42, %v270_v63  ;;  %v185_v5 = vpop.xlane.xlu2 %184  ;;  %v277_v8 = vmul.f32 %v1089_v3, %v223_v48  ;;  %vm283_vm11 = vweird.f32 %v1089_v3  ;;  %v134_v38 = vpop.xlane.xlu1 %133 }
 0x13b   :  { %1090 = vrsqrt.f32 %v224_v21  ;;  %v201_v9 = vmul.f32 %v1385_v62, %v1385_v62  ;;  %v193_v10 = vmul.f32 %v185_v5, %v1324_v49  ;;  %v347_v13 = vmax.f32 %v339_v6, 0.0  ;;  %vm284_vm13 = vmor %vm282_vm12, %vm283_vm11 }
 0x13c   :  { %v278_v11 = vmul.f32 %v1089_v3, %v277_v8  ;;  %v275_v14 = vsel %vm274_vm10, %v1087_v42, %v271_v4  ;;  %v1404_v47 = vmul.f32 %v1324_v49, %v134_v38  ;;  %vm292_vm15 = vweird.f32 %v224_v21 }
 0x13d   :  { %v209_v16 = vsub.f32 %v193_v10, %v201_v9  ;;  %v353_v19 = vpack.c.bf16 %v347_v13, %v346_v12  ;;  %v318_v25 = vmul.f32 %v310_v15, %v275_v14  ;;  %v313_v12 = vsub.f32 %v1297_v33, %v1385_v62 }
 0x13e   :  { %v279_v17 = vmul.f32 0.5, %v278_v11  ;;  %v195_v56 = vmul.f32 %v1404_v47, %v1404_v47 }
 0x13f   :  { %v217_v23 = vmax.f32 %v209_v16, 0.0  ;;  %437 = vmatmul.bf16.vlgmr.msra.gmra.mxu3 %v353_v19  ;;  %v329_v41 = vmul.f32 %v1370_v46, %v318_v25 }
 0x140   :  { %v132_v20 = vpop.xlane.xlu0 %131  ;;  %v280_v28 = vsub.f32 1.5, %v279_v17 }
 0x141   :  { %v1091_v26 = vpop.eup %1090  ;;  %v1395_v29 = vmul.f32 %v1324_v49, %v132_v20  ;;  %v225_v32 = vadd.f32 1e-05, %v217_v23  ;;  %v340_v53 = vadd.f32 %v1381_v58, %v329_v41 }
 0x142   :  { %v287_v31 = vmul.f32 %v1091_v26, %v224_v21  ;;  %v171_v35 = vpop.xlane.xlu2 %170  ;;  %v281_v37 = vmul.f32 %v1089_v3, %v280_v28  ;;  %vm293_vm14 = vweird.f32 %v1091_v26 }
 0x143   :  { %v194_v24 = vmul.f32 %v1395_v29, %v1395_v29  ;;  %v186_v7 = vmul.f32 %v171_v35, %v1324_v49  ;;  %1092 = vrsqrt.f32 %v225_v32  ;;  %vm294_vm0 = vmor %vm292_vm15, %vm293_vm14  ;;  %v348_v61 = vmax.f32 %v340_v53, 0.0 }
 0x144   :  { %v288_v40 = vmul.f32 %v1091_v26, %v287_v31  ;;  %v285_v43 = vsel %vm284_vm13, %v1089_v3, %v281_v37  ;;  %vm302_vm2 = vweird.f32 %v225_v32  ;;  %v306_v62 = vsub.f32 %v1305_v36, %v1395_v29 }
 0x145   :  { %v202_v42 = vsub.f32 %v186_v7, %v194_v24  ;;  %v319_v48 = vmul.f32 %v311_v39, %v285_v43  ;;  %v307_v39 = vsub.f32 %v1299_v34, %v1404_v47 }
 0x146   :  { %v289_v45 = vmul.f32 0.5, %v288_v40 }
 0x147   :  { %v210_v50 = vmax.f32 %v202_v42, 0.0  ;;  %v330_v52 = vmul.f32 %v1370_v46, %v319_v48 }
 0x148   :  { %v290_v51 = vsub.f32 1.5, %v289_v45  ;;  %v173_v18 = vpop.xlane.xlu0 %172 }
 0x149   :  { %v218_v27 = vadd.f32 1e-05, %v210_v50  ;;  %v187_v22 = vmul.f32 %v173_v18, %v1324_v49  ;;  %v1093_v54 = vpop.eup %1092  ;;  %v341_v57 = vadd.f32 %v1381_v58, %v330_v52 }
 0x14a   :  { %v291_v55 = vmul.f32 %v1091_v26, %v290_v51  ;;  %v297_v59 = vmul.f32 %v1093_v54, %v225_v32  ;;  %vm303_vm1 = vweird.f32 %v1093_v54  ;;  %v1076_v51 = vld [vmem:[%s1629_s6] ss:$0 sm:$0xff] }
 0x14b   :  { %1094 = vrsqrt.f32 %v218_v27  ;;  %v203_v60 = vsub.f32 %v187_v22, %v195_v56  ;;  %v349_v63 = vmax.f32 %v341_v57, 0.0  ;;  %vm304_vm3 = vmor %vm302_vm2, %vm303_vm1  ;;  %vm232_vm5 = vweird.f32 %v218_v27 }
 0x14c   :  { %v298_v0 = vmul.f32 %v1093_v54, %v297_v59  ;;  %v295_v1 = vsel %vm294_vm0, %v1091_v26, %v291_v55 }
 0x14d   :  { %v211_v3 = vmax.f32 %v203_v60, 0.0  ;;  %v354_v4 = vpack.c.bf16 %v349_v63, %v348_v61  ;;  %v320_v8 = vmul.f32 %v312_v2, %v295_v1 }
 0x14e   :  { %v299_v5 = vmul.f32 0.5, %v298_v0 }
 0x14f   :  { %v219_v6 = vadd.f32 1e-05, %v211_v3  ;;  %442 = vmatmul.bf16.gmra.mxu3 %v354_v4  ;;  %v331_v30 = vmul.f32 %v1370_v46, %v320_v8  ;;  %v1052_v8 = vld [vmem:[#allocation2 + $0x38] sm:$0xff] }
 0x150   :  { %v300_v10 = vsub.f32 1.5, %v299_v5  ;;  %1061 = vmatpush.bf16.msra.mxu2 %v1052_v8  ;;  %741 = vmatpush.bf16.msrb.mxu1 %v1052_v8 }
 0x151   :  { %v1095_v9 = vpop.eup %1094  ;;  %1096 = vrsqrt.f32 %v219_v6  ;;  %v342_v23 = vadd.f32 %v1381_v58, %v331_v30  ;;  %vm242_vm8 = vweird.f32 %v219_v6 }
 0x152   :  { %v227_v21 = vmul.f32 %v1095_v9, %v218_v27  ;;  %v301_v11 = vmul.f32 %v1093_v54, %v300_v10  ;;  %vm233_vm4 = vweird.f32 %v1095_v9  ;;  %v1050_v10 = vld [vmem:[#allocation2 + $0x28] sm:$0xff] }
 0x153   :  { %vm234_vm6 = vmor %vm232_vm5, %vm233_vm4  ;;  %v350_v28 = vmax.f32 %v342_v23, 0.0 }
 0x154   :  { %v228_v13 = vmul.f32 %v1095_v9, %v227_v21  ;;  %v305_v44 = vsel %vm304_vm3, %v1093_v54, %v301_v11  ;;  %v1049_v21 = vld [vmem:[#allocation2 + $0x20] sm:$0xff]  ;;  %v1048_v11 = vld [vmem:[#allocation2 + $0x18] sm:$0xff] }
 0x155   :  { %v321_v15 = vmul.f32 %v313_v12, %v305_v44 }
 0x156   :  { %v229_v14 = vmul.f32 0.5, %v228_v13 }
 0x157   :  { %v1097_v16 = vpop.eup %1096  ;;  %v332_v19 = vmul.f32 %v1370_v46, %v321_v15  ;;  %v1047_v15 = vld [vmem:[#allocation2 + $0x10] sm:$0xff] }
 0x158   :  { %v230_v17 = vsub.f32 1.5, %v229_v14  ;;  %v237_v20 = vmul.f32 %v1097_v16, %v219_v6  ;;  %vm243_vm7 = vweird.f32 %v1097_v16 }
 0x159   :  { %v343_v26 = vadd.f32 %v1381_v58, %v332_v19  ;;  %vm244_vm9 = vmor %vm242_vm8, %vm243_vm7  ;;  %v1046_v19 = vld [vmem:[#allocation2 + $0x8] sm:$0xff] }
 0x15a   :  { %v231_v25 = vmul.f32 %v1095_v9, %v230_v17  ;;  %v238_v33 = vmul.f32 %v1097_v16, %v237_v20 }
 0x15b   :  { %v351_v31 = vmax.f32 %v343_v26, 0.0 }
 0x15c   :  { %v235_v32 = vsel %vm234_vm6, %v1095_v9, %v231_v25  ;;  %v239_v35 = vmul.f32 0.5, %v238_v33  ;;  %v1051_v9 = vld [vmem:[#allocation2 + $0x30] sm:$0xff] }
 0x15d   :  { %v355_v37 = vpack.c.bf16 %v351_v31, %v350_v28  ;;  %v314_v38 = vmul.f32 %v306_v62, %v235_v32  ;;  %1062 = vmatpush.bf16.msra.mxu2 %v1051_v9  ;;  %742 = vmatpush.bf16.msrb.mxu1 %v1051_v9  ;;  %v1045_v62 = vld [vmem:[#allocation2] sm:$0xff] }
 0x15e   :  { %v240_v24 = vsub.f32 1.5, %v239_v35 }
 0x15f   :  { %447 = vmatmul.bf16.gmra.mxu3 %v355_v37  ;;  %v325_v40 = vmul.f32 %v1370_v46, %v314_v38 }
 0x160   :  { %v241_v7 = vmul.f32 %v1097_v16, %v240_v24 }
 0x161   :  { %v336_v29 = vadd.f32 %v1381_v58, %v325_v40  ;;  %1063 = vmatpush.bf16.msra.mxu2 %v1050_v10  ;;  %743 = vmatpush.bf16.msrb.mxu1 %v1050_v10 }
 0x162   :  { %v245_v41 = vsel %vm244_vm9, %v1097_v16, %v241_v7 }
 0x163   :  { %v315_v42 = vmul.f32 %v307_v39, %v245_v41  ;;  %v344_v45 = vmax.f32 %v336_v29, 0.0 }
 0x165   :  { %v326_v36 = vmul.f32 %v1370_v46, %v315_v42  ;;  %1064 = vmatpush.bf16.msra.mxu2 %v1049_v21  ;;  %744 = vmatpush.bf16.msrb.mxu1 %v1049_v21 }
 0x167   :  { %v337_v43 = vadd.f32 %v1381_v58, %v326_v36 }
 0x169   :  { %v345_v48 = vmax.f32 %v337_v43, 0.0  ;;  %1065 = vmatpush.bf16.msra.mxu2 %v1048_v11  ;;  %745 = vmatpush.bf16.msrb.mxu1 %v1048_v11 }
 0x16b   :  { %v352_v50 = vpack.c.bf16 %v345_v48, %v344_v45 }
 0x16d   :  { %432 = vmatmul.bf16.vlgmr.msra.gmra.mxu1 %v352_v50  ;;  %1066 = vmatpush.bf16.msra.mxu2 %v1047_v15 }
 0x16e   :  { %746 = vmatpush.bf16.msrb.mxu1 %v1047_v15  ;;  %v1509_v15 = vld [vmem:[%s1631_s8] ss:$0 sm:$0xff] }
 0x171   :  { %1067 = vmatpush.bf16.msra.mxu2 %v1046_v19 }
 0x172   :  { %747 = vmatpush.bf16.msrb.mxu1 %v1046_v19 }
 0x175   :  { %1068 = vmatpush.bf16.msra.mxu2 %v1045_v62 }
 0x176   :  { %748 = vmatpush.bf16.msrb.mxu1 %v1045_v62 }
 0x1c2   :  { %v438_v34 = vpop.f32.mrf.mxu3 }
 0x1c3   :  { %v1431_v47 = vadd.f32 %v1076_v51, %v438_v34 }
 0x1c5   :  { %459 = vadd.xlane.f32.xlu1 %v1431_v47  ;;  %v481_v46 = vmul.f32 %v1431_v47, %v1431_v47 }
 0x1c7   :  { %491 = vadd.xlane.f32.xlu0 %v481_v46 }
 0x1ca   :  { %v440_v18 = vpop.f32.mrf.mxu3 }
 0x1cb   :  { %v1436_v52 = vadd.f32 %v1076_v51, %v440_v18 }
 0x1cd   :  { %461 = vadd.xlane.f32.xlu2 %v1436_v52  ;;  %v482_v58 = vmul.f32 %v1436_v52, %v1436_v52 }
 0x1cf   :  { %493 = vadd.xlane.f32.xlu1 %v482_v58 }
 0x1d2   :  { %v443_v53 = vpop.f32.mrf.mxu3 }
 0x1d3   :  { %v1441_v27 = vadd.f32 %v1076_v51, %v443_v53 }
 0x1d5   :  { %463 = vadd.xlane.f32.xlu2 %v1441_v27  ;;  %v483_v22 = vmul.f32 %v1441_v27, %v1441_v27 }
 0x1d7   :  { %495 = vadd.xlane.f32.xlu1 %v483_v22 }
 0x1da   :  { %v445_v54 = vpop.f32.mrf.mxu3 }
 0x1db   :  { %v1446_v55 = vadd.f32 %v1076_v51, %v445_v54 }
 0x1dd   :  { %465 = vadd.xlane.f32.xlu0 %v1446_v55  ;;  %v484_v56 = vmul.f32 %v1446_v55, %v1446_v55 }
 0x1df   :  { %497 = vadd.xlane.f32.xlu2 %v484_v56 }
 0x1e2   :  { %v448_v57 = vpop.f32.mrf.mxu3 }
 0x1e3   :  { %v1451_v59 = vadd.f32 %v1076_v51, %v448_v57 }
 0x1e5   :  { %467 = vadd.xlane.f32.xlu0 %v1451_v59  ;;  %v485_v60 = vmul.f32 %v1451_v59, %v1451_v59 }
 0x1e7   :  { %499 = vadd.xlane.f32.xlu2 %v485_v60 }
 0x1ea   :  { %v433_v61 = vpop.f32.mrf.mxu1  ;;  %v450_v0 = vpop.f32.mrf.mxu3 }
 0x1eb   :  { %v1456_v63 = vadd.f32 %v1076_v51, %v433_v61  ;;  %v1458_v1 = vadd.f32 %v1076_v51, %v450_v0 }
 0x1ed   :  { %455 = vadd.xlane.f32.xlu1 %v1456_v63  ;;  %v486_v2 = vmul.f32 %v1458_v1, %v1458_v1  ;;  %v479_v5 = vmul.f32 %v1456_v63, %v1456_v63 }
 0x1ef   :  { %501 = vadd.xlane.f32.xlu0 %v486_v2 }
 0x1f2   :  { %v435_v3 = vpop.f32.mrf.mxu1 }
 0x1f3   :  { %v1463_v4 = vadd.f32 %v1076_v51, %v435_v3 }
 0x1f5   :  { %457 = vadd.xlane.f32.xlu2 %v1463_v4  ;;  %469 = vadd.xlane.f32.xlu1 %v1458_v1  ;;  %v480_v6 = vmul.f32 %v1463_v4, %v1463_v4 }
 0x1f7   :  { %487 = vadd.xlane.f32.xlu0 %v479_v5  ;;  %v1495_v5 = vld [vmem:[%s1630_s7] ss:$0 sm:$0xff] }
 0x1fd   :  { %489 = vadd.xlane.f32.xlu1 %v480_v6 }
 0x238   :  { %v460_v12 = vpop.xlane.xlu1 %459 }
 0x239   :  { %v473_v13 = vmul.f32 %v460_v12, %v1324_v49 }
 0x23a   :  { %v492_v30 = vpop.xlane.xlu0 %491 }
 0x23b   :  { %v513_v44 = vmul.f32 %v473_v13, %v473_v13  ;;  %v505_v14 = vmul.f32 %v492_v30, %v1324_v49  ;;  %v625_v57 = vsub.f32 %v1431_v47, %v473_v13 }
 0x23d   :  { %v521_v16 = vsub.f32 %v505_v14, %v513_v44 }
 0x23f   :  { %v529_v17 = vmax.f32 %v521_v16, 0.0 }
 0x240   :  { %v462_v23 = vpop.xlane.xlu2 %461 }
 0x241   :  { %v537_v20 = vadd.f32 1e-05, %v529_v17  ;;  %v1474_v25 = vmul.f32 %v462_v23, %v1324_v49 }
 0x242   :  { %v494_v26 = vpop.xlane.xlu1 %493 }
 0x243   :  { %1098 = vrsqrt.f32 %v537_v20  ;;  %v514_v33 = vmul.f32 %v1474_v25, %v1474_v25  ;;  %v506_v28 = vmul.f32 %v494_v26, %v1324_v49  ;;  %vm569_vm11 = vweird.f32 %v537_v20 }
 0x244   :  { %v626_v30 = vsub.f32 %v1436_v52, %v1474_v25 }
 0x245   :  { %v522_v31 = vsub.f32 %v506_v28, %v514_v33 }
 0x247   :  { %v530_v32 = vmax.f32 %v522_v31, 0.0 }
 0x248   :  { %v464_v35 = vpop.xlane.xlu2 %463 }
 0x249   :  { %v1099_v37 = vpop.eup %1098  ;;  %v1480_v38 = vmul.f32 %v464_v35, %v1324_v49  ;;  %v538_v7 = vadd.f32 1e-05, %v530_v32 }
 0x24a   :  { %v564_v24 = vmul.f32 %v1099_v37, %v537_v20  ;;  %v496_v39 = vpop.xlane.xlu1 %495  ;;  %vm570_vm10 = vweird.f32 %v1099_v37 }
 0x24b   :  { %v515_v40 = vmul.f32 %v1480_v38, %v1480_v38  ;;  %v507_v41 = vmul.f32 %v496_v39, %v1324_v49  ;;  %1100 = vrsqrt.f32 %v538_v7  ;;  %vm571_vm12 = vmor %vm569_vm11, %vm570_vm10  ;;  %vm579_vm14 = vweird.f32 %v538_v7 }
 0x24c   :  { %v565_v42 = vmul.f32 %v1099_v37, %v564_v24 }
 0x24d   :  { %v523_v36 = vsub.f32 %v507_v41, %v515_v40 }
 0x24e   :  { %v566_v29 = vmul.f32 0.5, %v565_v42  ;;  %v627_v42 = vsub.f32 %v1441_v27, %v1480_v38 }
 0x24f   :  { %v531_v43 = vmax.f32 %v523_v36, 0.0 }
 0x250   :  { %v567_v45 = vsub.f32 1.5, %v566_v29  ;;  %v466_v48 = vpop.xlane.xlu0 %465 }
 0x251   :  { %v539_v50 = vadd.f32 1e-05, %v531_v43  ;;  %v1486_v51 = vmul.f32 %v466_v48, %v1324_v49  ;;  %v1101_v34 = vpop.eup %1100 }
 0x252   :  { %v568_v46 = vmul.f32 %v1099_v37, %v567_v45  ;;  %v498_v18 = vpop.xlane.xlu2 %497  ;;  %v574_v58 = vmul.f32 %v1101_v34, %v538_v7  ;;  %vm580_vm13 = vweird.f32 %v1101_v34 }
 0x253   :  { %1102 = vrsqrt.f32 %v539_v50  ;;  %v516_v53 = vmul.f32 %v1486_v51, %v1486_v51  ;;  %v508_v22 = vmul.f32 %v498_v18, %v1324_v49  ;;  %vm581_vm15 = vmor %vm579_vm14, %vm580_vm13  ;;  %vm589_vm1 = vweird.f32 %v539_v50 }
 0x254   :  { %v575_v54 = vmul.f32 %v1101_v34, %v574_v58  ;;  %v572_v56 = vsel %vm571_vm12, %v1099_v37, %v568_v46 }
 0x255   :  { %v524_v60 = vsub.f32 %v508_v22, %v516_v53  ;;  %v633_v3 = vmul.f32 %v625_v57, %v572_v56  ;;  %v628_v56 = vsub.f32 %v1446_v55, %v1486_v51 }
 0x256   :  { %v576_v61 = vmul.f32 0.5, %v575_v54 }
 0x257   :  { %v532_v0 = vmax.f32 %v524_v60, 0.0  ;;  %v644_v14 = vmul.f32 %v1495_v5, %v633_v3 }
 0x258   :  { %v468_v2 = vpop.xlane.xlu0 %467  ;;  %v577_v8 = vsub.f32 1.5, %v576_v61 }
 0x259   :  { %v1103_v6 = vpop.eup %1102  ;;  %v1498_v9 = vmul.f32 %v468_v2, %v1324_v49  ;;  %v540_v21 = vadd.f32 1e-05, %v532_v0  ;;  %v655_v52 = vadd.f32 %v1509_v15, %v644_v14 }
 0x25a   :  { %v584_v10 = vmul.f32 %v1103_v6, %v539_v50  ;;  %v500_v11 = vpop.xlane.xlu2 %499  ;;  %v578_v47 = vmul.f32 %v1101_v34, %v577_v8  ;;  %vm590_vm0 = vweird.f32 %v1103_v6 }
 0x25b   :  { %v517_v12 = vmul.f32 %v1498_v9, %v1498_v9  ;;  %v509_v13 = vmul.f32 %v500_v11, %v1324_v49  ;;  %1104 = vrsqrt.f32 %v540_v21  ;;  %v663_v24 = vmax.f32 %v655_v52, 0.0  ;;  %vm591_vm2 = vmor %vm589_vm1, %vm590_vm0 }
 0x25c   :  { %v585_v44 = vmul.f32 %v1103_v6, %v584_v10  ;;  %v582_v17 = vsel %vm581_vm15, %v1101_v34, %v578_v47  ;;  %vm599_vm4 = vweird.f32 %v540_v21 }
 0x25d   :  { %v525_v16 = vsub.f32 %v509_v13, %v517_v12  ;;  %v634_v23 = vmul.f32 %v626_v30, %v582_v17 }
 0x25e   :  { %v586_v19 = vmul.f32 0.5, %v585_v44 }
 0x25f   :  { %v533_v20 = vmax.f32 %v525_v16, 0.0  ;;  %v645_v62 = vmul.f32 %v1495_v5, %v634_v23 }
 0x260   :  { %v456_v26 = vpop.xlane.xlu1 %455  ;;  %v587_v33 = vsub.f32 1.5, %v586_v19 }
 0x261   :  { %v1513_v25 = vadd.f32 1e-05, %v533_v20  ;;  %v1105_v28 = vpop.eup %1104  ;;  %v656_v35 = vadd.f32 %v1509_v15, %v645_v62  ;;  %v1520_v29 = vmul.f32 %v456_v26, %v1324_v49 }
 0x262   :  { %v588_v31 = vmul.f32 %v1103_v6, %v587_v33  ;;  %v502_v32 = vpop.xlane.xlu0 %501  ;;  %v594_v37 = vmul.f32 %v1105_v28, %v540_v21  ;;  %vm600_vm3 = vweird.f32 %v1105_v28 }
 0x263   :  { %1106 = vrsqrt.f32 %v1513_v25  ;;  %v664_v7 = vmax.f32 %v656_v35, 0.0  ;;  %v510_v58 = vmul.f32 %v502_v32, %v1324_v49  ;;  %v511_v22 = vmul.f32 %v1520_v29, %v1520_v29  ;;  %vm601_vm5 = vmor %vm599_vm4, %vm600_vm3 }
 0x264   :  { %v595_v39 = vmul.f32 %v1105_v28, %v594_v37  ;;  %v592_v41 = vsel %vm591_vm2, %v1103_v6, %v588_v31  ;;  %vm609_vm7 = vweird.f32 %v1513_v25  ;;  %v629_v35 = vsub.f32 %v1451_v59, %v1498_v9 }
 0x265   :  { %v670_v40 = vpack.c.bf16 %v664_v7, %v663_v24  ;;  %v635_v46 = vmul.f32 %v627_v42, %v592_v41  ;;  %v623_v9 = vsub.f32 %v1456_v63, %v1520_v29 }
 0x266   :  { %v596_v36 = vmul.f32 0.5, %v595_v39 }
 0x267   :  { %754 = vmatmul.bf16.vlgmr.msra.gmra.mxu2 %v670_v40  ;;  %v646_v3 = vmul.f32 %v1495_v5, %v635_v46 }
 0x268   :  { %v470_v43 = vpop.xlane.xlu1 %469  ;;  %v597_v50 = vsub.f32 1.5, %v596_v36  ;;  %v458_v34 = vpop.xlane.xlu2 %457 }
 0x269   :  { %v1523_v45 = vmul.f32 %v470_v43, %v1324_v49  ;;  %v1107_v48 = vpop.eup %1106  ;;  %v1535_v61 = vmul.f32 %v458_v34, %v1324_v49  ;;  %v657_v30 = vadd.f32 %v1509_v15, %v646_v3 }
 0x26a   :  { %v604_v18 = vmul.f32 %v1107_v48, %v1513_v25  ;;  %v488_v38 = vpop.xlane.xlu0 %487  ;;  %v598_v53 = vmul.f32 %v1105_v28, %v597_v50  ;;  %vm610_vm6 = vweird.f32 %v1107_v48 }
 0x26b   :  { %v518_v27 = vmul.f32 %v1523_v45, %v1523_v45  ;;  %v503_v54 = vmul.f32 %v488_v38, %v1324_v49  ;;  %v512_v12 = vmul.f32 %v1535_v61, %v1535_v61  ;;  %v665_v19 = vmax.f32 %v657_v30, 0.0  ;;  %vm611_vm8 = vmor %vm609_vm7, %vm610_vm6 }
 0x26c   :  { %v605_v57 = vmul.f32 %v1107_v48, %v604_v18  ;;  %v602_v2 = vsel %vm601_vm5, %v1105_v28, %v598_v53 }
 0x26d   :  { %v526_v60 = vsub.f32 %v510_v58, %v518_v27  ;;  %v519_v0 = vsub.f32 %v503_v54, %v511_v22  ;;  %v636_v8 = vmul.f32 %v628_v56, %v602_v2 }
 0x26e   :  { %v606_v10 = vmul.f32 0.5, %v605_v57 }
 0x26f   :  { %v534_v6 = vmax.f32 %v526_v60, 0.0  ;;  %v527_v21 = vmax.f32 %v519_v0, 0.0  ;;  %v647_v51 = vmul.f32 %v1495_v5, %v636_v8 }
 0x270   :  { %v490_v11 = vpop.xlane.xlu1 %489  ;;  %v607_v14 = vsub.f32 1.5, %v606_v10 }
 0x271   :  { %v542_v47 = vadd.f32 1e-05, %v534_v6  ;;  %v504_v55 = vmul.f32 %v490_v11, %v1324_v49  ;;  %v535_v13 = vadd.f32 1e-05, %v527_v21  ;;  %v658_v16 = vadd.f32 %v1509_v15, %v647_v51 }
 0x272   :  { %v608_v26 = vmul.f32 %v1107_v48, %v607_v14 }
 0x273   :  { %1108 = vrsqrt.f32 %v542_v47  ;;  %v520_v44 = vsub.f32 %v504_v55, %v512_v12  ;;  %v666_v23 = vmax.f32 %v658_v16, 0.0  ;;  %vm619_vm11 = vweird.f32 %v542_v47 }
 0x274   :  { %1110 = vrsqrt.f32 %v535_v13  ;;  %v612_v32 = vsel %vm611_vm8, %v1107_v48, %v608_v26  ;;  %v630_v48 = vsub.f32 %v1458_v1, %v1523_v45  ;;  %vm549_vm13 = vweird.f32 %v535_v13 }
 0x275   :  { %v528_v17 = vmax.f32 %v520_v44, 0.0  ;;  %v671_v33 = vpack.c.bf16 %v666_v23, %v665_v19  ;;  %v637_v40 = vmul.f32 %v629_v35, %v612_v32  ;;  %v624_v45 = vsub.f32 %v1463_v4, %v1535_v61  ;;  %v1079_v61 = vld [vmem:[%s1633_s10] ss:$0 sm:$0xff] }
 0x277   :  { %v536_v20 = vadd.f32 1e-05, %v528_v17  ;;  %759 = vmatmul.bf16.gmra.mxu2 %v671_v33  ;;  %v648_v59 = vmul.f32 %v1495_v5, %v637_v40 }
 0x279   :  { %v1109_v62 = vpop.eup %1108  ;;  %1112 = vrsqrt.f32 %v536_v20  ;;  %v659_v22 = vadd.f32 %v1509_v15, %v648_v59  ;;  %vm559_vm0 = vweird.f32 %v536_v20 }
 0x27a   :  { %v1111_v49 = vpop.eup %1110  ;;  %v614_v52 = vmul.f32 %v1109_v62, %v542_v47  ;;  %vm620_vm9 = vweird.f32 %v1109_v62 }
 0x27b   :  { %v544_v28 = vmul.f32 %v1111_v49, %v535_v13  ;;  %vm550_vm10 = vweird.f32 %v1111_v49  ;;  %vm621_vm12 = vmor %vm619_vm11, %vm620_vm9  ;;  %v667_v56 = vmax.f32 %v659_v22, 0.0 }
 0x27c   :  { %v615_v31 = vmul.f32 %v1109_v62, %v614_v52  ;;  %vm551_vm14 = vmor %vm549_vm13, %vm550_vm10 }
 0x27d   :  { %v545_v37 = vmul.f32 %v1111_v49, %v544_v28 }
 0x27e   :  { %v616_v24 = vmul.f32 0.5, %v615_v31 }
 0x27f   :  { %v1113_v7 = vpop.eup %1112  ;;  %v546_v39 = vmul.f32 0.5, %v545_v37 }
 0x280   :  { %v617_v41 = vsub.f32 1.5, %v616_v24  ;;  %v554_v42 = vmul.f32 %v1113_v7, %v536_v20  ;;  %vm560_vm15 = vweird.f32 %v1113_v7 }
 0x281   :  { %v547_v36 = vsub.f32 1.5, %v546_v39  ;;  %vm561_vm1 = vmor %vm559_vm0, %vm560_vm15 }
 0x282   :  { %v618_v25 = vmul.f32 %v1109_v62, %v617_v41  ;;  %v555_v43 = vmul.f32 %v1113_v7, %v554_v42 }
 0x283   :  { %v548_v50 = vmul.f32 %v1111_v49, %v547_v36 }
 0x284   :  { %v622_v34 = vsel %vm621_vm12, %v1109_v62, %v618_v25  ;;  %v556_v46 = vmul.f32 0.5, %v555_v43 }
 0x285   :  { %v638_v18 = vmul.f32 %v630_v48, %v622_v34  ;;  %v552_v58 = vsel %vm551_vm14, %v1111_v49, %v548_v50 }
 0x286   :  { %v557_v27 = vsub.f32 1.5, %v556_v46  ;;  %v631_v38 = vmul.f32 %v623_v9, %v552_v58 }
 0x287   :  { %v649_v53 = vmul.f32 %v1495_v5, %v638_v18 }
 0x288   :  { %v558_v1 = vmul.f32 %v1113_v7, %v557_v27  ;;  %v642_v29 = vmul.f32 %v1495_v5, %v631_v38 }
 0x289   :  { %v660_v63 = vadd.f32 %v1509_v15, %v649_v53 }
 0x28a   :  { %v562_v54 = vsel %vm561_vm1, %v1113_v7, %v558_v1  ;;  %v653_v3 = vadd.f32 %v1509_v15, %v642_v29 }
 0x28b   :  { %v668_v57 = vmax.f32 %v660_v63, 0.0  ;;  %v632_v60 = vmul.f32 %v624_v45, %v562_v54 }
 0x28c   :  { %v661_v8 = vmax.f32 %v653_v3, 0.0 }
 0x28d   :  { %v672_v0 = vpack.c.bf16 %v668_v57, %v667_v56  ;;  %v643_v2 = vmul.f32 %v1495_v5, %v632_v60 }
 0x28f   :  { %764 = vmatmul.bf16.gmra.mxu2 %v672_v0  ;;  %v654_v6 = vadd.f32 %v1509_v15, %v643_v2 }
 0x291   :  { %v662_v10 = vmax.f32 %v654_v6, 0.0 }
 0x293   :  { %v669_v4 = vpack.c.bf16 %v662_v10, %v661_v8 }
 0x295   :  { %749 = vmatmul.bf16.vlgmr.msrb.gmra.mxu1 %v669_v4 }
 0x2ea   :  { %v755_v21 = vpop.f32.mrf.mxu2 }
 0x2eb   :  { %v756_v11 = vadd.f32 %v1079_v61, %v755_v21 }
 0x2ed   :  { %774 = vmax.xlane.f32.xlu1 %v756_v11 }
 0x2f2   :  { %v757_v47 = vpop.f32.mrf.mxu2 }
 0x2f3   :  { %v758_v30 = vadd.f32 %v1079_v61, %v757_v47 }
 0x2fa   :  { %v760_v12 = vpop.f32.mrf.mxu2 }
 0x2fb   :  { %v761_v16 = vadd.f32 %v1079_v61, %v760_v12 }
 0x302   :  { %v762_v55 = vpop.f32.mrf.mxu2 }
 0x303   :  { %v763_v5 = vadd.f32 %v1079_v61, %v762_v55 }
 0x305   :  { %780 = vmax.xlane.f32.xlu1 %v763_v5 }
 0x312   :  { %v750_v51 = vpop.f32.mrf.mxu1  ;;  %v765_v14 = vpop.f32.mrf.mxu2 }
 0x313   :  { %v751_v13 = vadd.f32 %v1079_v61, %v750_v51  ;;  %v766_v17 = vadd.f32 %v1079_v61, %v765_v14 }
 0x315   :  { %770 = vmax.xlane.f32.xlu2 %v751_v13 }
 0x31a   :  { %v752_v15 = vpop.f32.mrf.mxu1  ;;  %v767_v19 = vpop.f32.mrf.mxu2 }
 0x31b   :  { %v753_v44 = vadd.f32 %v1079_v61, %v752_v15  ;;  %v768_v23 = vadd.f32 %v1079_v61, %v767_v19 }
 0x31d   :  { %772 = vmax.xlane.f32.xlu0 %v753_v44  ;;  %776 = vmax.xlane.f32.xlu2 %v758_v30 }
 0x325   :  { %778 = vmax.xlane.f32.xlu0 %v761_v16  ;;  %782 = vmax.xlane.f32.xlu2 %v766_v17 }
 0x32d   :  { %784 = vmax.xlane.f32.xlu0 %v768_v23 }
 0x360   :  { %v775_v20 = vpop.xlane.xlu1 %774 }
 0x361   :  { %v788_v26 = vsub.f32 %v756_v11, %v775_v20 }
 0x363   :  { %v798_v33 = vmul.f32 1.442695, %v788_v26 }
 0x365   :  { %1114 = vpow2.f32 %v798_v33 }
 0x36b   :  { %v1115_v62 = vpop.eup %1114 }
 0x36c   :  { %814 = vadd.xlane.f32.xlu0 %v1115_v62 }
 0x378   :  { %v781_v49 = vpop.xlane.xlu1 %780 }
 0x379   :  { %v791_v52 = vsub.f32 %v763_v5, %v781_v49 }
 0x37b   :  { %v804_v28 = vmul.f32 1.442695, %v791_v52 }
 0x37d   :  { %1116 = vpow2.f32 %v804_v28 }
 0x383   :  { %v1564_v31 = vpop.eup %1116 }
 0x384   :  { %820 = vadd.xlane.f32.xlu0 %v1564_v31 }
 0x388   :  { %v771_v32 = vpop.xlane.xlu2 %770 }
 0x389   :  { %v786_v35 = vsub.f32 %v751_v13, %v771_v32 }
 0x38b   :  { %v794_v37 = vmul.f32 1.442695, %v786_v35 }
 0x38d   :  { %1118 = vpow2.f32 %v794_v37 }
 0x390   :  { %v773_v24 = vpop.xlane.xlu0 %772  ;;  %v777_v7 = vpop.xlane.xlu2 %776 }
 0x391   :  { %v787_v39 = vsub.f32 %v753_v44, %v773_v24  ;;  %v789_v40 = vsub.f32 %v758_v30, %v777_v7 }
 0x393   :  { %v1567_v41 = vpop.eup %1118  ;;  %v796_v42 = vmul.f32 1.442695, %v787_v39  ;;  %v800_v36 = vmul.f32 1.442695, %v789_v40 }
 0x394   :  { %810 = vadd.xlane.f32.xlu1 %v1567_v41 }
 0x395   :  { %1120 = vpow2.f32 %v796_v42 }
 0x396   :  { %1122 = vpow2.f32 %v800_v36 }
 0x398   :  { %v779_v25 = vpop.xlane.xlu0 %778  ;;  %v783_v43 = vpop.xlane.xlu2 %782 }
 0x399   :  { %v790_v48 = vsub.f32 %v761_v16, %v779_v25  ;;  %v792_v50 = vsub.f32 %v766_v17, %v783_v43 }
 0x39b   :  { %v1570_v59 = vpop.eup %1120  ;;  %v802_v9 = vmul.f32 1.442695, %v790_v48  ;;  %v806_v34 = vmul.f32 1.442695, %v792_v50 }
 0x39c   :  { %v1572_v46 = vpop.eup %1122  ;;  %812 = vadd.xlane.f32.xlu2 %v1570_v59 }
 0x39d   :  { %1124 = vpow2.f32 %v802_v9  ;;  %816 = vadd.xlane.f32.xlu1 %v1572_v46 }
 0x39e   :  { %1126 = vpow2.f32 %v806_v34 }
 0x3a0   :  { %v785_v18 = vpop.xlane.xlu0 %784 }
 0x3a1   :  { %v793_v58 = vsub.f32 %v768_v23, %v785_v18 }
 0x3a3   :  { %v1576_v27 = vpop.eup %1124  ;;  %v808_v38 = vmul.f32 1.442695, %v793_v58 }
 0x3a4   :  { %v1578_v53 = vpop.eup %1126  ;;  %818 = vadd.xlane.f32.xlu2 %v1576_v27 }
 0x3a5   :  { %1128 = vpow2.f32 %v808_v38  ;;  %822 = vadd.xlane.f32.xlu1 %v1578_v53 }
 0x3ab   :  { %v1582_v22 = vpop.eup %1128 }
 0x3ac   :  { %824 = vadd.xlane.f32.xlu2 %v1582_v22 }
 0x3df   :  { %v815_v1 = vpop.xlane.xlu0 %814 }
 0x3e0   :  { %1130 = vrcp.f32 %v815_v1  ;;  %v867_v54 = vand.u32 2147483648, %v815_v1  ;;  %v865_v57 = vand.u32 2147483647, %v815_v1  ;;  %vm861_vm3 = vweird.f32 %v815_v1 }
 0x3e2   :  { %v868_v0 = vor.u32 1.1754944e-38, %v867_v54  ;;  %vm866_vm5 = vcmp.eq.f32.partialorder %v865_v57, 8.507059e+37 }
 0x3e6   :  { %v1131_v45 = vpop.eup %1130 }
 0x3e7   :  { %v857_v63 = vmul.f32 %v1131_v45, %v815_v1  ;;  %vm862_vm2 = vweird.f32 %v1131_v45 }
 0x3e8   :  { %vm863_vm4 = vmor %vm861_vm3, %vm862_vm2 }
 0x3e9   :  { %v858_v29 = vsub.f32 1.0, %v857_v63 }
 0x3eb   :  { %v859_v56 = vmul.f32 %v1131_v45, %v858_v29 }
 0x3ed   :  { %v860_v60 = vadd.f32 %v1131_v45, %v859_v56 }
 0x3ef   :  { %v864_v2 = vsel %vm863_vm4, %v1131_v45, %v860_v60 }
 0x3f0   :  { %v869_v3 = vsel %vm866_vm5, %v868_v0, %v864_v2 }
 0x3f1   :  { %v870_v6 = vmul.f32 %v1115_v62, %v869_v3 }
 0x3f3   :  { %948 = vst [vmem:[%s1634_s11 + $0x10] sm:$0xff] %v870_v6 }
 0x3f7   :  { %v821_v8 = vpop.xlane.xlu0 %820 }
 0x3f8   :  { %1132 = vrcp.f32 %v821_v8  ;;  %v912_v21 = vand.u32 2147483648, %v821_v8  ;;  %v910_v47 = vand.u32 2147483647, %v821_v8  ;;  %vm906_vm7 = vweird.f32 %v821_v8 }
 0x3fa   :  { %v913_v5 = vor.u32 1.1754944e-38, %v912_v21  ;;  %vm911_vm9 = vcmp.eq.f32.partialorder %v910_v47, 8.507059e+37 }
 0x3fe   :  { %v1133_v10 = vpop.eup %1132 }
 0x3ff   :  { %v902_v4 = vmul.f32 %v1133_v10, %v821_v8  ;;  %vm907_vm6 = vweird.f32 %v1133_v10 }
 0x400   :  { %vm908_vm8 = vmor %vm906_vm7, %vm907_vm6 }
 0x401   :  { %v903_v61 = vsub.f32 1.0, %v902_v4 }
 0x403   :  { %v904_v11 = vmul.f32 %v1133_v10, %v903_v61 }
 0x405   :  { %v905_v55 = vadd.f32 %v1133_v10, %v904_v11 }
 0x407   :  { %v811_v12 = vpop.xlane.xlu1 %810  ;;  %v909_v51 = vsel %vm908_vm8, %v1133_v10, %v905_v55 }
 0x408   :  { %1134 = vrcp.f32 %v811_v12  ;;  %v914_v13 = vsel %vm911_vm9, %v913_v5, %v909_v51  ;;  %v837_v19 = vand.u32 2147483648, %v811_v12  ;;  %v835_v20 = vand.u32 2147483647, %v811_v12 }
 0x409   :  { %v915_v15 = vmul.f32 %v1564_v31, %v914_v13  ;;  %vm831_vm11 = vweird.f32 %v811_v12 }
 0x40a   :  { %v838_v62 = vor.u32 1.1754944e-38, %v837_v19  ;;  %vm836_vm13 = vcmp.eq.f32.partialorder %v835_v20, 8.507059e+37 }
 0x40b   :  { %951 = vst [vmem:[%s1634_s11 + $0x28] sm:$0xff] %v915_v15 }
 0x40e   :  { %v1135_v30 = vpop.eup %1134 }
 0x40f   :  { %v827_v44 = vmul.f32 %v1135_v30, %v811_v12  ;;  %v813_v14 = vpop.xlane.xlu2 %812  ;;  %vm832_vm10 = vweird.f32 %v1135_v30 }
 0x410   :  { %v817_v16 = vpop.xlane.xlu1 %816  ;;  %1136 = vrcp.f32 %v813_v14  ;;  %vm833_vm12 = vmor %vm831_vm11, %vm832_vm10  ;;  %v852_v40 = vand.u32 2147483648, %v813_v14  ;;  %v850_v25 = vand.u32 2147483647, %v813_v14  ;;  %vm846_vm0 = vweird.f32 %v813_v14 }
 0x411   :  { %v828_v17 = vsub.f32 1.0, %v827_v44  ;;  %1138 = vrcp.f32 %v817_v16  ;;  %v882_v42 = vand.u32 2147483648, %v817_v16  ;;  %v880_v48 = vand.u32 2147483647, %v817_v16 }
 0x412   :  { %vm876_vm1 = vweird.f32 %v817_v16  ;;  %vm851_vm4 = vcmp.eq.f32.partialorder %v850_v25, 8.507059e+37 }
 0x413   :  { %v829_v23 = vmul.f32 %v1135_v30, %v828_v17  ;;  %v883_v58 = vor.u32 1.1754944e-38, %v882_v42  ;;  %vm881_vm5 = vcmp.eq.f32.partialorder %v880_v48, 8.507059e+37 }
 0x415   :  { %v830_v26 = vadd.f32 %v1135_v30, %v829_v23 }
 0x416   :  { %v1137_v33 = vpop.eup %1136 }
 0x417   :  { %v1139_v49 = vpop.eup %1138  ;;  %v834_v52 = vsel %vm833_vm12, %v1135_v30, %v830_v26  ;;  %v842_v28 = vmul.f32 %v1137_v33, %v813_v14  ;;  %v1592_v31 = vpop.xlane.xlu2 %818  ;;  %vm847_vm14 = vweird.f32 %v1137_v33 }
 0x418   :  { %v839_v32 = vsel %vm836_vm13, %v838_v62, %v834_v52  ;;  %v872_v35 = vmul.f32 %v1139_v49, %v817_v16  ;;  %v823_v37 = vpop.xlane.xlu1 %822  ;;  %1140 = vrcp.f32 %v1592_v31  ;;  %vm877_vm15 = vweird.f32 %v1139_v49  ;;  %vm848_vm2 = vmor %vm846_vm0, %vm847_vm14 }
 0x419   :  { %v840_v24 = vmul.f32 %v1567_v41, %v839_v32  ;;  %v843_v7 = vsub.f32 1.0, %v842_v28  ;;  %1142 = vrcp.f32 %v823_v37  ;;  %v853_v41 = vor.u32 1.1754944e-38, %v852_v40  ;;  %vm878_vm3 = vmor %vm876_vm1, %vm877_vm15 }
 0x41a   :  { %v873_v39 = vsub.f32 1.0, %v872_v35  ;;  %v897_v3 = vand.u32 2147483648, %v1592_v31  ;;  %v927_v6 = vand.u32 2147483648, %v823_v37  ;;  %v895_v10 = vand.u32 2147483647, %v1592_v31 }
 0x41b   :  { %946 = vst [vmem:[%s1634_s11] sm:$0xff] %v840_v24  ;;  %v844_v36 = vmul.f32 %v1137_v33, %v843_v7  ;;  %v925_v4 = vand.u32 2147483647, %v823_v37  ;;  %vm891_vm8 = vweird.f32 %v1592_v31  ;;  %vm921_vm9 = vweird.f32 %v823_v37 }
 0x41c   :  { %v874_v43 = vmul.f32 %v1139_v49, %v873_v39  ;;  %v898_v21 = vor.u32 1.1754944e-38, %v897_v3  ;;  %v928_v47 = vor.u32 1.1754944e-38, %v927_v6  ;;  %vm896_vm12 = vcmp.eq.f32.partialorder %v895_v10, 8.507059e+37 }
 0x41d   :  { %v845_v50 = vadd.f32 %v1137_v33, %v844_v36  ;;  %vm926_vm13 = vcmp.eq.f32.partialorder %v925_v4, 8.507059e+37 }
 0x41e   :  { %v1141_v9 = vpop.eup %1140  ;;  %v875_v34 = vadd.f32 %v1139_v49, %v874_v43 }
 0x41f   :  { %v1143_v18 = vpop.eup %1142  ;;  %v849_v38 = vsel %vm848_vm2, %v1137_v33, %v845_v50  ;;  %v887_v1 = vmul.f32 %v1141_v9, %v1592_v31  ;;  %v825_v45 = vpop.xlane.xlu2 %824  ;;  %vm892_vm6 = vweird.f32 %v1141_v9 }
 0x420   :  { %v879_v63 = vsel %vm878_vm3, %v1139_v49, %v875_v34  ;;  %v854_v29 = vsel %vm851_vm4, %v853_v41, %v849_v38  ;;  %v917_v54 = vmul.f32 %v1143_v18, %v823_v37  ;;  %1144 = vrcp.f32 %v825_v45  ;;  %vm893_vm10 = vmor %vm891_vm8, %vm892_vm6 }
 0x421   :  { %v884_v56 = vsel %vm881_vm5, %v883_v58, %v879_v63  ;;  %v855_v57 = vmul.f32 %v1570_v59, %v854_v29  ;;  %v888_v60 = vsub.f32 1.0, %v887_v1  ;;  %vm922_vm7 = vweird.f32 %v1143_v18 }
 0x422   :  { %v885_v0 = vmul.f32 %v1572_v46, %v884_v56  ;;  %v918_v2 = vsub.f32 1.0, %v917_v54  ;;  %vm923_vm11 = vmor %vm921_vm9, %vm922_vm7  ;;  %v942_v14 = vand.u32 2147483648, %v825_v45  ;;  %v940_v17 = vand.u32 2147483647, %v825_v45 }
 0x423   :  { %947 = vst [vmem:[%s1634_s11 + $0x8] sm:$0xff] %v855_v57  ;;  %v889_v8 = vmul.f32 %v1141_v9, %v888_v60  ;;  %vm936_vm15 = vweird.f32 %v825_v45 }
 0x424   :  { %949 = vst [vmem:[%s1634_s11 + $0x18] sm:$0xff] %v885_v0  ;;  %v919_v59 = vmul.f32 %v1143_v18, %v918_v2  ;;  %v943_v23 = vor.u32 1.1754944e-38, %v942_v14  ;;  %vm941_vm1 = vcmp.eq.f32.partialorder %v940_v17, 8.507059e+37 }
 0x425   :  { %v890_v46 = vadd.f32 %v1141_v9, %v889_v8 }
 0x426   :  { %v920_v61 = vadd.f32 %v1143_v18, %v919_v59  ;;  %v1145_v11 = vpop.eup %1144 }
 0x427   :  { %v894_v12 = vsel %vm893_vm10, %v1141_v9, %v890_v46  ;;  %v932_v51 = vmul.f32 %v1145_v11, %v825_v45  ;;  %vm937_vm14 = vweird.f32 %v1145_v11 }
 0x428   :  { %v924_v55 = vsel %vm923_vm11, %v1143_v18, %v920_v61  ;;  %v899_v5 = vsel %vm896_vm12, %v898_v21, %v894_v12  ;;  %vm938_vm0 = vmor %vm936_vm15, %vm937_vm14 }
 0x429   :  { %v929_v13 = vsel %vm926_vm13, %v928_v47, %v924_v55  ;;  %v900_v15 = vmul.f32 %v1576_v27, %v899_v5  ;;  %v933_v44 = vsub.f32 1.0, %v932_v51 }
 0x42a   :  { %v930_v30 = vmul.f32 %v1578_v53, %v929_v13 }
 0x42b   :  { %950 = vst [vmem:[%s1634_s11 + $0x20] sm:$0xff] %v900_v15  ;;  %v934_v16 = vmul.f32 %v1145_v11, %v933_v44 }
 0x42c   :  { %952 = vst [vmem:[%s1634_s11 + $0x30] sm:$0xff] %v930_v30 }
 0x42d   :  { %v935_v19 = vadd.f32 %v1145_v11, %v934_v16 }
 0x42f   :  { %v939_v27 = vsel %vm938_vm0, %v1145_v11, %v935_v19 }
 0x430   :  { %v944_v53 = vsel %vm941_vm1, %v943_v23, %v939_v27 }
 0x431   :  { %v945_v20 = vmul.f32 %v1582_v22, %v944_v53 }
 0x433   :  { %953 = vst [vmem:[%s1634_s11 + $0x38] sm:$0xff] %v945_v20 }
 0x434   :  { %958 = vsyncpa [#allocation3], 1 }

</bundles_post_ra>
